<compile_context>
chip_gen: v6e
topology: v6e:2x2x1
jax: 0.10.0
libtpu: 0.0.40
codegen_flags: <defaults>
</compile_context>

<pallas_src>
import functools

import numpy as np

import jax
import jax.numpy as jnp
from jax.experimental import pallas as pl
from jax.experimental.pallas import tpu as pltpu


# ----------------------------------------------------------------------------
# Static branch metadata (mirrors the PyTorch len(x) dispatch).
# ----------------------------------------------------------------------------
_BRANCHES = ("relation", "projection", "selection", "join")
_D_IN = {"relation": 63, "projection": 69, "selection": 49, "join": 77}
_HIDDEN = {"relation": 48, "projection": 48, "selection": 48, "join": 64}
_LEN_TO_IDX = {63: 0, 69: 1, 49: 2, 77: 3}

D_OUT = 48
D_IN_PAD = 128   # lane-aligned input width (all branches <= 77)
H_PAD = 64       # hidden width padded to max(48, 64)
D_OUT_PAD = 128  # lane-dense output width; real output is the first 48 lanes


# ----------------------------------------------------------------------------
# Kernel bodies
# ----------------------------------------------------------------------------
def _mlp_compute(x, w1, b1, w2, b2, out_dtype):
    # Linear -> (dropout = identity in eval) -> tanh -> Linear, f32 accumulate.
    h = jnp.dot(x, w1, preferred_element_type=jnp.float32)
    h = jnp.tanh(h + b1.astype(jnp.float32))
    y = jnp.dot(h.astype(w2.dtype), w2, preferred_element_type=jnp.float32)
    return (y + b2.astype(jnp.float32)).astype(out_dtype)


def _single_mlp_kernel(x_ref, w1_ref, b1_ref, w2_ref, b2_ref, out_ref):
    out_ref[...] = _mlp_compute(x_ref[...], w1_ref[...], b1_ref[...],
                                w2_ref[...], b2_ref[...], out_ref.dtype)


def _batched_mlp_kernel(bid_ref, x_ref, w1_ref, b1_ref, w2_ref, b2_ref, out_ref):
    # bid_ref (scalar prefetch) is consumed only by the index_maps.
    del bid_ref
    out_ref[...] = _mlp_compute(x_ref[...], w1_ref[...], b1_ref[...],
                                w2_ref[...], b2_ref[...], out_ref.dtype)


# ----------------------------------------------------------------------------
# Parameters
# ----------------------------------------------------------------------------
def _init_linear(key, d_in, d_out):
    """Deterministic PyTorch-style Linear init; weight stored as (d_in, d_out)."""
    kw, kb = jax.random.split(key)
    bound = 1.0 / jnp.sqrt(jnp.float32(d_in))
    w = jax.random.uniform(kw, (d_in, d_out), jnp.float32, -bound, bound)
    b = jax.random.uniform(kb, (1, d_out), jnp.float32, -bound, bound)
    return w, b


def make_node_embedding_params(seed=42, dtype=jnp.float32):
    """Returns (kernel_params, ref_params).

    kernel_params: branch-stacked, zero-padded, tile-aligned arrays
        w1: (4, 128, 64)   b1: (4, 1, 64)
        w2: (4, 64, 128)   b2: (4, 1, 128)
    ref_params: exact (unpadded) per-branch weights for the pure-JAX reference.
    On v6e/v7x you may pass dtype=jnp.bfloat16 (f32 accumulation is kept).
    """
    key = jax.random.PRNGKey(seed)
    keys = jax.random.split(key, 8)

    w1s = jnp.zeros((4, D_IN_PAD, H_PAD), jnp.float32)
    b1s = jnp.zeros((4, 1, H_PAD), jnp.float32)
    w2s = jnp.zeros((4, H_PAD, D_OUT_PAD), jnp.float32)
    b2s = jnp.zeros((4, 1, D_OUT_PAD), jnp.float32)
    ref = {}

    for i, name in enumerate(_BRANCHES):
        d_in, h = _D_IN[name], _HIDDEN[name]
        w1, b1 = _init_linear(keys[2 * i], d_in, h)
        w2, b2 = _init_linear(keys[2 * i + 1], h, D_OUT)
        ref[name] = (w1, b1, w2, b2)
        w1s = w1s.at[i, :d_in, :h].set(w1)
        b1s = b1s.at[i, 0, :h].set(b1.reshape(-1))
        w2s = w2s.at[i, :h, :D_OUT].set(w2)
        b2s = b2s.at[i, 0, :D_OUT].set(b2.reshape(-1))

    params = {
        "w1": w1s.astype(dtype), "b1": b1s.astype(dtype),
        "w2": w2s.astype(dtype), "b2": b2s.astype(dtype),
    }
    return params, ref


# ----------------------------------------------------------------------------
# Single-node forward (drop-in for NodeEmbedding.forward, eval mode).
# Grid-less pallas_call: whole arrays resident in VMEM, no pipeline scaffolding.
# ----------------------------------------------------------------------------
def _single_call(x_pad, w1, b1, w2, b2):
    return pl.pallas_call(
        _single_mlp_kernel,
        out_shape=jax.ShapeDtypeStruct((x_pad.shape[0], D_OUT_PAD), jnp.float32),
        in_specs=[pl.BlockSpec(memory_space=pltpu.MemorySpace.VMEM)] * 5,
        out_specs=pl.BlockSpec(memory_space=pltpu.MemorySpace.VMEM),
    )(x_pad, w1, b1, w2, b2)


@jax.jit
def _single_forward_impl(params, x_pad, branch_idx):
    # branch_idx is a static Python int (closed over via jit retrace per value).
    return _single_call(x_pad,
                        params["w1"][branch_idx], params["b1"][branch_idx],
                        params["w2"][branch_idx], params["b2"][branch_idx])


def node_embedding_forward(params, x):
    """Pallas implementation of NodeEmbedding.forward (eval mode), single node."""
    xf = jnp.reshape(jnp.asarray(x), (-1,))
    d = int(xf.shape[0])
    if d not in _LEN_TO_IDX:
        raise ValueError(f"Unexpected length {d}.")
    b = _LEN_TO_IDX[d]
    dtype = params["w1"].dtype
    x_pad = jnp.zeros((1, D_IN_PAD), dtype).at[0, :d].set(xf.astype(dtype))
    out = _single_forward_impl(params, x_pad, b)
    return out[0, :D_OUT]


# ----------------------------------------------------------------------------
# Batched forward: one kernel launch for a whole (mixed-branch) node batch.
# ----------------------------------------------------------------------------
@functools.partial(jax.jit, static_argnames=("tile_b",))
def node_embedding_forward_batched(params, x_padded, tile_branch_ids, *, tile_b=128):
    """x_padded: (B, 128) rows (zero-padded features), B = num_tiles * tile_b.
    All rows inside batch tile t belong to branch tile_branch_ids[t] (int32).
    Returns (B, 48) float32 embeddings (padded rows yield garbage-free zeros+bias
    only in pad lanes, which are sliced away)."""
    b_total, d_pad = x_padded.shape
    if d_pad != D_IN_PAD or b_total % tile_b != 0:
        raise ValueError("x_padded must have shape (k * tile_b, 128)")
    num_tiles = b_total // tile_b
    x_padded = x_padded.astype(params["w1"].dtype)

    grid_spec = pltpu.PrefetchScalarGridSpec(
        num_scalar_prefetch=1,
        grid=(num_tiles,),
        in_specs=[
            pl.BlockSpec((tile_b, D_IN_PAD), lambda i, bid: (i, 0)),
            pl.BlockSpec((None, D_IN_PAD, H_PAD), lambda i, bid: (bid[i], 0, 0)),
            pl.BlockSpec((None, 1, H_PAD), lambda i, bid: (bid[i], 0, 0)),
            pl.BlockSpec((None, H_PAD, D_OUT_PAD), lambda i, bid: (bid[i], 0, 0)),
            pl.BlockSpec((None, 1, D_OUT_PAD), lambda i, bid: (bid[i], 0, 0)),
        ],
        out_specs=pl.BlockSpec((tile_b, D_OUT_PAD), lambda i, bid: (i, 0)),
    )
    out = pl.pallas_call(
        _batched_mlp_kernel,
        out_shape=jax.ShapeDtypeStruct((b_total, D_OUT_PAD), jnp.float32),
        grid_spec=grid_spec,
        compiler_params=pltpu.CompilerParams(
            dimension_semantics=("parallel",)),
    )(tile_branch_ids, x_padded, params["w1"], params["b1"],
      params["w2"], params["b2"])
    return out[:, :D_OUT]


def batch_nodes(nodes, tile_b=128):
    """Host-side packing: group nodes by branch, zero-pad features to 128 lanes
    and each branch group to a multiple of tile_b rows.

    Returns (x_padded (B,128) f32 jnp array,
             tile_branch_ids (B//tile_b,) int32 jnp array,
             row_of_node np.int64[len(nodes)]  -- output row of each input node).
    """
    groups = {i: [] for i in range(len(_BRANCHES))}
    for idx, x in enumerate(nodes):
        flat = np.asarray(x, dtype=np.float32).reshape(-1)
        if flat.shape[0] not in _LEN_TO_IDX:
            raise ValueError(f"Unexpected length {flat.shape[0]}.")
        groups[_LEN_TO_IDX[flat.shape[0]]].append((idx, flat))

    blocks, tile_bids = [], []
    row_of_node = np.zeros(len(nodes), dtype=np.int64)
    base = 0
    for b in range(len(_BRANCHES)):
        if not groups[b]:
            continue
        n = len(groups[b])
        n_pad = -(-n // tile_b) * tile_b
        blk = np.zeros((n_pad, D_IN_PAD), dtype=np.float32)
        for r, (idx, flat) in enumerate(groups[b]):
            blk[r, :flat.shape[0]] = flat
            row_of_node[idx] = base + r
        blocks.append(blk)
        tile_bids.extend([b] * (n_pad // tile_b))
        base += n_pad

    x_padded = np.concatenate(blocks, axis=0)
    return (jnp.asarray(x_padded),
            jnp.asarray(np.asarray(tile_bids, dtype=np.int32)),
            row_of_node)


# ----------------------------------------------------------------------------
# Pure-JAX reference (unpadded weights)
# ----------------------------------------------------------------------------
def _reference_forward(ref_params, x):
    xf = jnp.reshape(jnp.asarray(x), (-1,)).astype(jnp.float32)
    name = _BRANCHES[_LEN_TO_IDX[int(xf.shape[0])]]
    w1, b1, w2, b2 = ref_params[name]
    h = jnp.tanh(xf @ w1 + b1.reshape(-1))
    return h @ w2 + b2.reshape(-1)


# ----------------------------------------------------------------------------
# Demo / correctness check
# ----------------------------------------------------------------------------
if __name__ == "__main__":
    params, ref_params = make_node_embedding_params(seed=42)

    key = jax.random.PRNGKey(0)
    k63, k69, k49, k77, kb = jax.random.split(key, 5)
    single_inputs = {
        "relation":   jax.random.normal(k63, (63,), jnp.float32),
        "projection": jax.random.normal(k69, (1, 69), jnp.float32),  # view(-1) flattens
        "selection":  jax.random.normal(k49, (7, 7), jnp.float32),   # view(-1) flattens
        "join":       jax.random.normal(k77, (77,), jnp.float32),
    }

    ok = True

    # 1) Single-node path (grid-less kernel), one call per branch.
    for name, x in single_inputs.items():
        y = jax.block_until_ready(node_embedding_forward(params, x))
        y_ref = _reference_forward(ref_params, x)
        assert y.shape == (48,), (name, y.shape)
        if not jnp.allclose(y, y_ref, atol=1e-4, rtol=1e-4):
            ok = False
            print(f"MISMATCH (single) branch={name}")

    # 2) Batched path: 20 mixed-branch nodes -> one pallas_call (tile_b=8 here
    #    to keep the demo small; use 128/256 in production for MXU fill).
    tile_b = 8
    node_keys = jax.random.split(kb, 20)
    lens = [63, 69, 49, 77] * 5
    nodes = [jax.random.normal(node_keys[i], (lens[i],), jnp.float32)
             for i in range(len(lens))]
    x_padded, tile_bids, row_of_node = batch_nodes(nodes, tile_b=tile_b)
    out = jax.block_until_ready(
        node_embedding_forward_batched(params, x_padded, tile_bids, tile_b=tile_b))
    for i, x in enumerate(nodes):
        y = out[int(row_of_node[i])]
        y_ref = _reference_forward(ref_params, x)
        if not jnp.allclose(y, y_ref, atol=1e-4, rtol=1e-4):
            ok = False
            print(f"MISMATCH (batched) node={i} len={lens[i]}")

    if ok:
        print("KERNEL_OK")
</pallas_src>

<mosaic_0001>
module attributes {stable_mosaic.version = 11 : i64} {
  func.func @_single_mlp_kernel(%arg0: memref<1x128xf32, #tpu.memory_space<vmem>>, %arg1: memref<128x64xf32, #tpu.memory_space<vmem>>, %arg2: memref<1x64xf32, #tpu.memory_space<vmem>>, %arg3: memref<64x128xf32, #tpu.memory_space<vmem>>, %arg4: memref<1x128xf32, #tpu.memory_space<vmem>>, %arg5: memref<1x128xf32, #tpu.memory_space<vmem>>) attributes {dimension_semantics = [], scalar_prefetch = 0 : i64, scratch_operands = 0 : i64, tpu.core_type = #tpu.core_type<tc>} {
    %c0 = arith.constant 0 : index
    %c0_0 = arith.constant 0 : index
    %0 = vector.load %arg0[%c0, %c0_0] : memref<1x128xf32, #tpu.memory_space<vmem>>, vector<1x128xf32>
    %c0_1 = arith.constant 0 : index
    %c0_2 = arith.constant 0 : index
    %1 = vector.load %arg1[%c0_1, %c0_2] : memref<128x64xf32, #tpu.memory_space<vmem>>, vector<128x64xf32>
    %c0_3 = arith.constant 0 : index
    %c0_4 = arith.constant 0 : index
    %2 = vector.load %arg2[%c0_3, %c0_4] : memref<1x64xf32, #tpu.memory_space<vmem>>, vector<1x64xf32>
    %c0_5 = arith.constant 0 : index
    %c0_6 = arith.constant 0 : index
    %3 = vector.load %arg3[%c0_5, %c0_6] : memref<64x128xf32, #tpu.memory_space<vmem>>, vector<64x128xf32>
    %c0_7 = arith.constant 0 : index
    %c0_8 = arith.constant 0 : index
    %4 = vector.load %arg4[%c0_7, %c0_8] : memref<1x128xf32, #tpu.memory_space<vmem>>, vector<1x128xf32>
    %cst = arith.constant dense<0.000000e+00> : vector<1x64xf32>
    %5 = tpu.matmul %0, %1, %cst {dimension_numbers = #tpu.dot_dimension_numbers<[1], [0], [0], [1], [0, 0, 1, 1], [], []>} : vector<1x128xf32>, vector<128x64xf32>, vector<1x64xf32> -> vector<1x64xf32>
    %6 = arith.addf %5, %2 : vector<1x64xf32>
    %7 = math.tanh %6 : vector<1x64xf32>
    %cst_9 = arith.constant dense<0.000000e+00> : vector<1x128xf32>
    %8 = tpu.matmul %7, %3, %cst_9 {dimension_numbers = #tpu.dot_dimension_numbers<[1], [0], [0], [1], [0, 0, 1, 1], [], []>} : vector<1x64xf32>, vector<64x128xf32>, vector<1x128xf32> -> vector<1x128xf32>
    %9 = arith.addf %8, %4 : vector<1x128xf32>
    %c0_10 = arith.constant 0 : index
    %c0_11 = arith.constant 0 : index
    %10 = vector.load %arg5[%c0_10, %c0_11] : memref<1x128xf32, #tpu.memory_space<vmem>>, vector<1x128xf32>
    tpu.vector_store %arg5[%c0_10, %c0_11], %9 {strides = array<i32>} : memref<1x128xf32, #tpu.memory_space<vmem>>, vector<1x128xf32>,
    return
  }
}

</mosaic_0001>

<bundles_post_ra>
// kernel: _single_forward_impl.1
= control target key start
LH: loop header
LB: loop body
LE: loop exit
PB: predicated region body
PF: predicated region fallthrough
CT: control target
= control target key end

     0   :  { %v316_v1 = vmov 0.0   ;;  %vm317_vm0 = vmmov 0   ;;  %s459_s0 = inlined_call_operand.vmem [shape: f32[1,128], index: 0, kind: input, shape index: {}]   ;;  %s460_s1 = inlined_call_operand.vmem [shape: f32[128,64], index: 1, kind: input, shape index: {}]   ;;  %s461_s2 = inlined_call_operand.vmem [shape: f32[1,64], index: 2, kind: input, shape index: {}]   ;;  %s462_s3 = inlined_call_operand.vmem [shape: f32[64,128], index: 3, kind: input, shape index: {}]   ;;  %s463_s4 = inlined_call_operand.vmem [shape: f32[1,128], index: 4, kind: input, shape index: {}]   ;;  %s464_s5 = inlined_call_operand.hbm [shape: f32[1,128], index: 5, kind: output, shape index: {}]  }
   0x1   :  { %v37_v0 = vld [vmem:[%s460_s1 + $0x78] sm:$0xff]  ;;  %235 = vmatprep.subr.mxu0 %v316_v1  ;;  %v36_v2 = vld [vmem:[%s460_s1 + $0x70] sm:$0xff]  ;;  %267 = vmatprep.mubr.msk.f32.mxu0 %vm317_vm0, %v316_v1  ;;  %v35_v3 = vld [vmem:[%s460_s1 + $0x68] sm:$0xff] }
   0x2   :  { %236 = vmatpush3.msra.mxu0 %v37_v0  ;;  %270 = vmatprep.subr.mxu1 %v316_v1  ;;  %v34_v4 = vld [vmem:[%s460_s1 + $0x60] sm:$0xff] }
   0x3   :  { %237 = vmatprep.subr.mxu0 %v316_v1  ;;  %286 = vmatprep.mubr.msk.f32.mxu1 %vm317_vm0, %v316_v1 }
   0x4   :  { %238 = vmatpush3.msra.mxu0 %v36_v2 }
   0x5   :  { %239 = vmatprep.subr.mxu0 %v316_v1 }
   0x6   :  { %240 = vmatpush3.msra.mxu0 %v35_v3 }
   0x7   :  { %10 = vsyncpa [#allocation3], 0  ;;  %241 = vmatprep.subr.mxu0 %v316_v1  ;;  %v33_v5 = vld [vmem:[%s460_s1 + $0x58] sm:$0xff]  ;;  %v32_v6 = vld [vmem:[%s460_s1 + $0x50] sm:$0xff]  ;;  %vm119_vm1 = vcmask 523264  }
   0x8   :  { %242 = vmatpush3.msra.mxu0 %v34_v4  ;;  %v31_v7 = vld [vmem:[%s460_s1 + $0x48] sm:$0xff]  ;;  %v30_v8 = vld [vmem:[%s460_s1 + $0x40] sm:$0xff]  ;;  %v29_v9 = vld [vmem:[%s460_s1 + $0x38] sm:$0xff] }
   0x9   :  { %243 = vmatprep.subr.mxu0 %v316_v1  ;;  %v28_v10 = vld [vmem:[%s460_s1 + $0x30] sm:$0xff]  ;;  %v27_v11 = vld [vmem:[%s460_s1 + $0x28] sm:$0xff]  ;;  %v26_v12 = vld [vmem:[%s460_s1 + $0x20] sm:$0xff] }
   0xa   :  { %244 = vmatpush3.msra.mxu0 %v33_v5  ;;  %v25_v13 = vld [vmem:[%s460_s1 + $0x18] sm:$0xff]  ;;  %v24_v14 = vld [vmem:[%s460_s1 + $0x10] sm:$0xff]  ;;  %v23_v15 = vld [vmem:[%s460_s1 + $0x8] sm:$0xff] }
   0xb   :  { %245 = vmatprep.subr.mxu0 %v316_v1  ;;  %v22_v16 = vld [vmem:[%s460_s1] sm:$0xff]  ;;  %v46_v18 = vld [vmem:[%s462_s3 + $0x38] sm:$0xff]  ;;  %v45_v19 = vld [vmem:[%s462_s3 + $0x30] sm:$0xff] }
   0xc   :  { %246 = vmatpush3.msra.mxu0 %v32_v6  ;;  %v21_v17 = vld [vmem:[%s459_s0] sm:$0x1]  ;;  %271 = vmatpush3.msra.mxu1 %v46_v18  ;;  %v44_v20 = vld [vmem:[%s462_s3 + $0x28] sm:$0xff]  ;;  %v42_v22 = vld [vmem:[%s462_s3 + $0x18] sm:$0xff] }
   0xd   :  { %247 = vmatprep.subr.mxu0 %v316_v1  ;;  %272 = vmatprep.subr.mxu1 %v316_v1  ;;  %v43_v21 = vld [vmem:[%s462_s3 + $0x20] sm:$0xff]  ;;  %v41_v23 = vld [vmem:[%s462_s3 + $0x10] sm:$0xff]  ;;  %v40_v24 = vld [vmem:[%s462_s3 + $0x8] sm:$0xff] }
   0xe   :  { %248 = vmatpush3.msra.mxu0 %v31_v7  ;;  %273 = vmatpush3.msra.mxu1 %v45_v19  ;;  %v39_v25 = vld [vmem:[%s462_s3] sm:$0xff]  ;;  %s318_s3 = smov [#allocation2]  }
   0xf   :  { %249 = vmatprep.subr.mxu0 %v316_v1  ;;  %274 = vmatprep.subr.mxu1 %v316_v1  ;;  %v38_v26 = vld [vmem:[%s461_s2] sm:$0x1]  ;;  %s200_s20 = sshll.u32 %s318_s3, 4  ;;  %s201_s20 = int_to_ptr.vmem [resolvable:$true] %s200_s20 }
  0x10   :  { %250 = vmatpush3.msra.mxu0 %v30_v8  ;;  %275 = vmatpush3.msra.mxu1 %v44_v20  ;;  %v47_v31 = vld [vmem:[%s463_s4] sm:$0x1]  ;;  %s294_s21 = scalar_lea.vmem %s201_s20, 16  ;;  %s298_s2 = scalar_lea.vmem %s201_s20, 32 }
  0x11   :  { %251 = vmatprep.subr.mxu0 %v316_v1  ;;  %276 = vmatprep.subr.mxu1 %v316_v1  ;;  %p295_p0 = scmp.ne.s32.totalorder %s201_s20, %s294_s21  ;;  %p299_p1 = scmp.lt.s32.totalorder %s201_s20, %s201_s20 }
  0x12   :  { %252 = vmatpush3.msra.mxu0 %v29_v9  ;;  %277 = vmatpush3.msra.mxu1 %v43_v21  ;;  %p300_p2 = scmp.lt.s32.totalorder %s298_s2, %s294_s21 }
  0x13   :  { %253 = vmatprep.subr.mxu0 %v316_v1  ;;  %278 = vmatprep.subr.mxu1 %v316_v1 }
  0x14   :  { %254 = vmatpush3.msra.mxu0 %v28_v10  ;;  %279 = vmatpush3.msra.mxu1 %v42_v22  ;;  %p301_p3 = por %p300_p2, %p299_p1 }
  0x15   :  { %255 = vmatprep.subr.mxu0 %v316_v1  ;;  %280 = vmatprep.subr.mxu1 %v316_v1 }
  0x16   :  { %256 = vmatpush3.msra.mxu0 %v27_v11  ;;  %281 = vmatpush3.msra.mxu1 %v41_v23  ;;  %p302_p4 = pnand %p301_p3, %p295_p0 }
  0x17   :  { %257 = vmatprep.subr.mxu0 %v316_v1  ;;  %282 = vmatprep.subr.mxu1 %v316_v1 }
  0x18   :  { %258 = vmatpush3.msra.mxu0 %v26_v12  ;;  %283 = vmatpush3.msra.mxu1 %v40_v24 }
  0x19   :  { %259 = vmatprep.subr.mxu0 %v316_v1  ;;  %284 = vmatprep.subr.mxu1 %v316_v1 }
  0x1a   :  { %260 = vmatpush3.msra.mxu0 %v25_v13  ;;  %285 = vmatpush3.msra.mxu1 %v39_v25 }
  0x1b   :  { %261 = vmatprep.subr.mxu0 %v316_v1 }
  0x1c   :  { %262 = vmatpush3.msra.mxu0 %v24_v14 }
  0x1d   :  { %263 = vmatprep.subr.mxu0 %v316_v1 }
  0x1e   :  { %264 = vmatpush3.msra.mxu0 %v23_v15 }
  0x1f   :  { %265 = vmatprep.subr.mxu0 %v316_v1 }
  0x20   :  { %266 = vmatpush3.msra.mxu0 %v22_v16 }
  0x21   :  { %268 = vmatmul.mubr.f32.vlgmr.msra.gmra.mxu0 %v21_v17 }
  0xe1   :  { %v114_v27 = vpop.f32.mrf.mxu0 }
  0xe2   :  { %v115_v28 = vadd.f32 %v114_v27, %v38_v26 }
  0xe3   :  { %v269_v29 = vpop.f32.mrf.mxu0 }
  0xe4   :  { %292 = vtanh.f32 %v115_v28 }
  0xf1   :  { %v293_v30 = vpop.eup %292 }
  0xf2   :  { %287 = vmatmul.mubr.msk.f32.vlgmr.msra.gmra.mxu1 %vm119_vm1, %v293_v30 }
 0x1b2   :  { %v189_v32 = vpop.f32.mrf.mxu1 }
 0x1b3   :  { %v190_v33 = vadd.f32 %v189_v32, %v47_v31 }
 0x1b4   :  { %v288_v34 = vpop.f32.mrf.mxu1 }
 0x1b5   :  { %193 = vst [vmem:[#allocation2] sm:$0x1] %v190_v33 }
 0x1b6   :  { %305 = shalt.err (!%p302_p4)
}
 0x1b7   :  { %203 = dma.vmem_to_hbm [thread:$0]  %s201_s20, 16, %s464_s5, [#allocation3]  }
 0x1b8   :  { %314 = dma.done.wait [#allocation3], 16  }
 0x1b9   :  { %315 = vsyncadd [#allocation3], 4294967280 }
 0x1ba   :  { %207 = vsyncpa [#allocation3], 1 }

</bundles_post_ra>
